<compile_context>
chip_gen: v7x
topology: tpu7x:2x2x1
jax: 0.10.0
libtpu: 0.0.40
codegen_flags: <defaults>
</compile_context>

<pallas_src>
import jax
import jax.numpy as jnp
from jax.experimental import pallas as pl
from jax.experimental.pallas import tpu as pltpu

_INV_SQRT2 = 0.7071067811865476  # 1/sqrt(2)


def _gelu_exact_f32(g):
    # exact GELU: 0.5 * g * (1 + erf(g / sqrt(2)))  (torch F.gelu default)
    return 0.5 * g * (1.0 + jax.lax.erf(g * _INV_SQRT2))


def _geglu_split_kernel(a_ref, g_ref, o_ref):
    # a_ref / g_ref / o_ref: (tm, tn) tiles; the two halves arrive as
    # separately DMA'd windows of the same HBM array.
    a = a_ref[...].astype(jnp.float32)
    g = g_ref[...].astype(jnp.float32)
    o_ref[...] = (a * _gelu_exact_f32(g)).astype(o_ref.dtype)


def _geglu_fused_kernel(x_ref, o_ref):
    # Fallback for hidden sizes that are not a multiple of 128.
    # x_ref: (tm, 2*D) full-feature tile; o_ref: (tm, D).
    d = o_ref.shape[-1]
    a = x_ref[:, pl.ds(0, d)].astype(jnp.float32)
    g = x_ref[:, pl.ds(d, d)].astype(jnp.float32)
    o_ref[...] = (a * _gelu_exact_f32(g)).astype(o_ref.dtype)


def _round_up(v, m):
    return (v + m - 1) // m * m


def geglu(x):
    """x: (..., 2*D) -> dict with 'x': (..., D).  GeGLU, exact erf GELU."""
    *lead, two_d = x.shape
    assert two_d % 2 == 0, "last dim must be even for GeGLU chunk"
    d = two_d // 2

    x2 = x.reshape(-1, two_d)  # flatten leading dims (metadata-only reshape)
    m = x2.shape[0]
    itemsize = jnp.dtype(x.dtype).itemsize
    sub = {4: 8, 2: 16, 1: 32}.get(itemsize, 8)  # sublane multiple per dtype

    m_pad = m
    if d % 128 == 0:
        # ---- fast path: lane-dense half-windows, 2-D parallel grid ----
        tn = next(t for t in (2048, 1024, 512, 256, 128) if d % t == 0)
        # ~2 MiB per input tile; tm in [256, 1024] (always a multiple of 32).
        tm = min(1024, max(256, (2 * 1024 * 1024) // (tn * itemsize)))
        if m < tm:
            # Whole array fits in one row tile: shrink (and pad at most
            # sub-1 rows so block dims stay sublane-aligned and <= array).
            tm = _round_up(max(m, sub), sub)
            if tm != m:
                m_pad = tm
                x2 = jnp.pad(x2, ((0, m_pad - m), (0, 0)))
        g_off = d // tn  # block offset of the gates half along the lane axis

        out = pl.pallas_call(
            _geglu_split_kernel,
            out_shape=jax.ShapeDtypeStruct((m_pad, d), x.dtype),
            grid_spec=pltpu.PrefetchScalarGridSpec(
                num_scalar_prefetch=0,
                grid=(pl.cdiv(m_pad, tm), d // tn),
                in_specs=[
                    pl.BlockSpec((tm, tn), lambda i, j: (i, j)),          # a half
                    pl.BlockSpec((tm, tn), lambda i, j: (i, j + g_off)),  # gates
                ],
                out_specs=pl.BlockSpec((tm, tn), lambda i, j: (i, j)),
            ),
            compiler_params=pltpu.CompilerParams(
                dimension_semantics=("parallel", "parallel"),
                vmem_limit_bytes=48 * 1024 * 1024,
            ),
        )(x2, x2)
    else:
        # ---- fallback: full-feature blocks (block last dim == array dim) ----
        # Keep the block under ~4 MiB even for odd large feature sizes.
        max_rows = max(sub, ((4 * 1024 * 1024) // (two_d * itemsize)) // sub * sub)
        tm = min(512, max_rows)
        if m < tm:
            tm = _round_up(max(m, sub), sub)
            if tm != m:
                m_pad = tm
                x2 = jnp.pad(x2, ((0, m_pad - m), (0, 0)))

        out = pl.pallas_call(
            _geglu_fused_kernel,
            out_shape=jax.ShapeDtypeStruct((m_pad, d), x.dtype),
            grid_spec=pltpu.PrefetchScalarGridSpec(
                num_scalar_prefetch=0,
                grid=(pl.cdiv(m_pad, tm),),
                in_specs=[pl.BlockSpec((tm, two_d), lambda i: (i, 0))],
                out_specs=pl.BlockSpec((tm, d), lambda i: (i, 0)),
            ),
            compiler_params=pltpu.CompilerParams(
                dimension_semantics=("parallel",),
                vmem_limit_bytes=48 * 1024 * 1024,
            ),
        )(x2)

    if m_pad != m:
        out = out[:m]
    return {'x': out.reshape(*lead, d)}


if __name__ == "__main__":
    k0, k1, k2, k3 = jax.random.split(jax.random.PRNGKey(0), 4)

    def ref_geglu(x):
        a, g = jnp.split(x, 2, axis=-1)
        return a * (0.5 * g * (1.0 + jax.lax.erf(g.astype(jnp.float32)
                                                 * _INV_SQRT2)).astype(g.dtype))

    # Small hidden (fallback path): batch=2, seq=8, feature=64 -> halves of 32.
    x_small = jax.random.normal(k0, (2, 8, 64), dtype=jnp.float32)
    # Lane-dense hidden (fast path): batch=2, seq=8, feature=256 -> halves of 128.
    x_big = jax.random.normal(k1, (2, 8, 256), dtype=jnp.float32)
    # Ragged row count (exercises tiny-pad / edge handling): 3*7 = 21 rows.
    x_ragged = jax.random.normal(k2, (3, 7, 256), dtype=jnp.float32)
    # bf16 fast path.
    x_bf16 = jax.random.normal(k3, (2, 8, 512), dtype=jnp.bfloat16)

    for x, tol in ((x_small, 1e-5), (x_big, 1e-5), (x_ragged, 1e-5),
                   (x_bf16, 2e-2)):
        out = jax.block_until_ready(geglu(x)['x'])
        ref = ref_geglu(x)
        assert out.shape == ref.shape == x.shape[:-1] + (x.shape[-1] // 2,)
        assert jnp.allclose(out.astype(jnp.float32), ref.astype(jnp.float32),
                            atol=tol, rtol=tol), f"mismatch for shape {x.shape}"

    print("KERNEL_OK")
</pallas_src>

<mosaic_0001>
module attributes {stable_mosaic.version = 11 : i64} {
  func.func @_geglu_fused_kernel(%arg0: i32, %arg1: memref<16x64xf32, #tpu.memory_space<vmem>>, %arg2: memref<16x32xf32, #tpu.memory_space<vmem>>) attributes {dimension_semantics = [#tpu.dimension_semantics<parallel>], iteration_bounds = array<i64: 1>, scalar_prefetch = 0 : i64, scratch_operands = 0 : i64, tpu.core_type = #tpu.core_type<tc>, window_params = [{transform_indices = @transform_0, window_bounds = array<i64: 16, 64>}, {transform_indices = @transform_1, window_bounds = array<i64: 16, 32>}]} {
    %c0 = arith.constant 0 : index
    %c0_0 = arith.constant 0 : index
    %0 = vector.load %arg1[%c0, %c0_0] : memref<16x64xf32, #tpu.memory_space<vmem>>, vector<16x32xf32>
    %c0_1 = arith.constant 0 : index
    %c32 = arith.constant 32 : index
    %1 = vector.load %arg1[%c0_1, %c32] : memref<16x64xf32, #tpu.memory_space<vmem>>, vector<16x32xf32>
    %cst = arith.constant 5.000000e-01 : f32
    %2 = vector.broadcast %cst : f32 to vector<16x32xf32>
    %3 = arith.mulf %2, %1 : vector<16x32xf32>
    %cst_2 = arith.constant 0.707106769 : f32
    %4 = vector.broadcast %cst_2 : f32 to vector<16x32xf32>
    %5 = arith.mulf %1, %4 : vector<16x32xf32>
    %6 = math.erf %5 : vector<16x32xf32>
    %cst_3 = arith.constant 1.000000e+00 : f32
    %7 = vector.broadcast %cst_3 : f32 to vector<16x32xf32>
    %8 = arith.addf %7, %6 : vector<16x32xf32>
    %9 = arith.mulf %3, %8 : vector<16x32xf32>
    %10 = arith.mulf %0, %9 : vector<16x32xf32>
    %c0_4 = arith.constant 0 : index
    %c0_5 = arith.constant 0 : index
    %11 = vector.load %arg2[%c0_4, %c0_5] : memref<16x32xf32, #tpu.memory_space<vmem>>, vector<16x32xf32>
    tpu.vector_store %arg2[%c0_4, %c0_5], %10 {strides = array<i32>} : memref<16x32xf32, #tpu.memory_space<vmem>>, vector<16x32xf32>,
    return
  }
  func.func @transform_0(%arg0: i32) -> (i32, i32) {
    %c0_i32 = arith.constant 0 : i32
    %c0_i32_0 = arith.constant 0 : i32
    return %arg0, %c0_i32 : i32, i32
  }
  func.func @transform_1(%arg0: i32) -> (i32, i32) {
    %c0_i32 = arith.constant 0 : i32
    %c0_i32_0 = arith.constant 0 : i32
    return %arg0, %c0_i32 : i32, i32
  }
}

</mosaic_0001>

<bundles_post_ra>
// kernel: tpu_custom_call.1
= control target key start
LH: loop header
LB: loop body
LE: loop exit
PB: predicated region body
PF: predicated region fallthrough
CT: control target
= control target key end

     0   :  { %6 = vsyncpa [#allocation3], 0  ;;  %s167_s0 = inlined_call_operand.hbm [shape: f32[16,64], index: 0, kind: input, shape index: {}]   ;;  %s168_s1 = inlined_call_operand.hbm [shape: f32[16,32], index: 1, kind: output, shape index: {}]  }
   0x1   :  { %7 = vsyncpa [#allocation4], 0  ;;  %s122_s6 = smov [#allocation2]   ;;  %s74_s10 = scalar_lea.hbm %s167_s0, 256 }
   0x2   :  { %s13_s7 = sshll.u32 %s122_s6, 4  ;;  %p75_p0 = scmp.ne.s32.totalorder %s167_s0, %s74_s10  ;;  %s14_s7 = int_to_ptr.vmem [resolvable:$true] %s13_s7 }
   0x3   :  { %p78_p1 = scmp.lt.u32.totalorder %s74_s10, %s167_s0 }
   0x5   :  { %p80_p2 = pnand %p78_p1, %p75_p0 }
   0x7   :  { %83 = shalt.err (!%p80_p2)
}
   0x8   :  { %s84_s15 = scalar_lea.vmem %s14_s7, 256  ;;  %p89_p4 = scmp.lt.s32.totalorder %s14_s7, %s14_s7 }
   0x9   :  { %p85_p3 = scmp.ne.s32.totalorder %s14_s7, %s84_s15  ;;  %p90_p5 = scmp.lt.s32.totalorder %s84_s15, %s84_s15 }
   0xb   :  { %p91_p6 = por %p90_p5, %p89_p4 }
   0xd   :  { %p92_p7 = pnand %p91_p6, %p85_p3 }
   0xf   :  { %95 = shalt.err (!%p92_p7)
}
  0x10   :  { %s123_s16 = smov 128   ;;  %s124_s17 = smov 8  }
  0x11   :  { %19 = dma.hbm_to_vmem [thread:$0]  %s167_s0, 256, %s14_s7, [#allocation3], %s123_s16, %s123_s16, %s124_s17  }
  0x12   :  { %118 = dma.done.wait [#allocation3], 256  }
  0x13   :  { %119 = vsyncadd [#allocation3], 4294967040  ;;  %v23_v0 = vld [vmem:[#allocation2] sm:$0xff]  ;;  %v24_v1 = vld [vmem:[#allocation2 + $0x8] sm:$0xff]  ;;  %s125_s20 = smov 96   ;;  %vm45_vm0 = vcmask 261120  }
  0x14   :  { %v27_v2 = vmul.f32 0.70710677, %v23_v0  ;;  %v28_v3 = vmul.f32 0.70710677, %v24_v1  ;;  %v25_v4 = vmul.f32 0.5, %v23_v0  ;;  %v26_v8 = vmul.f32 0.5, %v24_v1 }
  0x15   :  { %s126_s0 = smov [#allocation5]  }
  0x16   :  { %70 = verf.f32 %v27_v2  ;;  %s53_s21 = sshll.u32 %s126_s0, 4  ;;  %s54_s21 = int_to_ptr.vmem [resolvable:$true] %s53_s21 }
  0x17   :  { %72 = verf.f32 %v28_v3  ;;  %s96_s22 = scalar_lea.vmem %s54_s21, 256  ;;  %p101_p9 = scmp.lt.s32.totalorder %s54_s21, %s54_s21 }
  0x18   :  { %p97_p8 = scmp.ne.s32.totalorder %s54_s21, %s96_s22  ;;  %p102_p10 = scmp.lt.s32.totalorder %s96_s22, %s96_s22 }
  0x1a   :  { %p103_p11 = por %p102_p10, %p101_p9 }
  0x1c   :  { %p104_p12 = pnand %p103_p11, %p97_p8 }
  0x20   :  { %v71_v5 = vpop.eup %70 }
  0x21   :  { %v73_v6 = vpop.eup %72  ;;  %v31_v7 = vadd.f32 1.0, %v71_v5 }
  0x22   :  { %v32_v9 = vadd.f32 1.0, %v73_v6 }
  0x23   :  { %v33_v10 = vmul.f32 %v31_v7, %v25_v4 }
  0x24   :  { %v34_v11 = vmul.f32 %v32_v9, %v26_v8 }
  0x25   :  { %37 = vrot.lane.b32.xlu0 %v33_v10, %s125_s20 }
  0x29   :  { %39 = vrot.lane.b32.xlu0 %v34_v11, %s125_s20 }
  0x97   :  { %v38_v12 = vpop.permute.xlu0 %37 }
  0x98   :  { %v43_v13 = vmul.f32 %v38_v12, %v23_v0 }
  0x9a   :  { %46 = vst.msk [vmem:[#allocation5] sm:$0xff] %vm45_vm0, %v43_v13 }
  0x9b   :  { %v40_v14 = vpop.permute.xlu0 %39 }
  0x9c   :  { %v44_v15 = vmul.f32 %v40_v14, %v24_v1 }
  0x9e   :  { %47 = vst.msk [vmem:[#allocation5 + $0x8] sm:$0xff] %vm45_vm0, %v44_v15 }
  0x9f   :  { %107 = shalt.err (!%p104_p12)
}
  0xa0   :  { %s108_s25 = scalar_lea.hbm %s168_s1, 256 }
  0xa1   :  { %p109_p13 = scmp.ne.s32.totalorder %s168_s1, %s108_s25  ;;  %p112_p0 = scmp.lt.u32.totalorder %s108_s25, %s168_s1 }
  0xa3   :  { %p114_p1 = pnand %p112_p0, %p109_p13 }
  0xa5   :  { %117 = shalt.err (!%p114_p1)
}
  0xa6   :  { %59 = dma.vmem_to_hbm [thread:$0]  %s54_s21, 256, %s168_s1, [#allocation4], %s123_s16, %s123_s16, %s124_s17  }
  0xa7   :  { %120 = dma.done.wait [#allocation4], 256  }
  0xa8   :  { %121 = vsyncadd [#allocation4], 4294967040 }
  0xa9   :  { %63 = vsyncpa [#allocation3], 1 }
  0xaa   :  { %64 = vsyncpa [#allocation4], 1 }

</bundles_post_ra>
